<compile_context>
chip_gen: v7x
topology: tpu7x:2x2x1
jax: 0.10.0
libtpu: 0.0.40
codegen_flags: <defaults>
</compile_context>

<pallas_src>
import math

import jax
import jax.numpy as jnp
from jax.experimental import pallas as pl
from jax.experimental.pallas import tpu as pltpu


# ----------------------------- kernels --------------------------------------

def _add_kernel(x_ref, r_ref, o_ref):
    # plain residual: out = x + x_res  (alpha frozen at 1 -> no multiply at all)
    o_ref[...] = x_ref[...] + r_ref[...]


def _scalar_scale_add_kernel(alpha_ref, x_ref, r_ref, o_ref):
    # rezero / scalar alpha: out = x * alpha + x_res ; alpha is a (1,1) SMEM scalar.
    a = alpha_ref[0, 0]
    xf = x_ref[...].astype(jnp.float32)
    rf = r_ref[...].astype(jnp.float32)
    o_ref[...] = (xf * a + rf).astype(o_ref.dtype)


def _layerscale_kernel(x_ref, r_ref, alpha_ref, o_ref):
    # layerscale: out = x * alpha + x_res ; alpha is a (1, tile_cols) f32 row
    # that broadcasts over the rows of the tile.
    xf = x_ref[...].astype(jnp.float32)
    rf = r_ref[...].astype(jnp.float32)
    o_ref[...] = (xf * alpha_ref[...] + rf).astype(o_ref.dtype)


# ----------------------------- tiling helpers --------------------------------

_TARGET_TILE_BYTES = 1 << 20   # ~1 MiB per input tile: ~85% HBM roofline plateau,
                               # and 3 streams x 2 buffers stays well under the
                               # 16 MiB v5e scoped-VMEM default.


def _sublane(dtype):
    # full-vreg packing: 8 rows for 4-byte dtypes, 16 for bf16, 32 for int8/fp8.
    return max(8, 32 // jnp.dtype(dtype).itemsize)


def _round_up(x, m):
    return ((x + m - 1) // m) * m


def _pick_tile_rows(n_rows, tile_cols, dtype):
    sub = _sublane(dtype)
    if n_rows <= sub:
        # block row-dim equals the full array dim -> always a legal block shape.
        return n_rows
    itemsize = jnp.dtype(dtype).itemsize
    rows = _TARGET_TILE_BYTES // max(1, tile_cols * itemsize)
    rows = max(sub, (rows // sub) * sub)
    # keep at least 2 grid steps when possible so v7x can shard rows across
    # both TensorCores (neutral on 1-TC v5e/v6e).
    rows = min(rows, _round_up(pl.cdiv(n_rows, 2), sub))
    return max(sub, rows)


def _pick_tile_cols(width):
    # `width` is a multiple of 128; largest multiple-of-128 divisor <= 2048.
    if width <= 2048:
        return width
    for c in range(2048, 0, -128):
        if width % c == 0:
            return c
    return 128


def _flat_view_shape(total):
    """Lane-dense (rows, w) view of `total` elements, or None if 128 ∤ total."""
    for w in (2048, 1024, 512, 256, 128):
        if total % w == 0:
            return total // w, w
    return None


# ----------------------------- drivers ---------------------------------------

def _residual_flat(x, x_res, alpha_scalar):
    """Scalar-alpha path (plain / rezero): alpha broadcasts over everything."""
    shape = x.shape
    dtype = x.dtype
    total = math.prod(shape) if shape else 1

    flat = _flat_view_shape(total)
    if flat is not None:
        n_rows, w = flat                      # lane-dense repack (free reshape)
    else:
        # element count not a multiple of 128: keep the natural trailing dim so
        # no data movement is needed; boundary stores are lane-masked.
        # TODO(synk): a rank-1 input with a huge, non-128-divisible length would
        # become a single wide block; not expected for this module's activations.
        w = shape[-1] if len(shape) >= 2 else total
        n_rows = total // w
    x2 = x.reshape(n_rows, w)
    r2 = x_res.reshape(n_rows, w)

    tile_rows = _pick_tile_rows(n_rows, w, dtype)
    grid = (pl.cdiv(n_rows, tile_rows),)      # ragged last block: no padding copy
    tile_spec = pl.BlockSpec((tile_rows, w), lambda i: (i, 0))

    if alpha_scalar is None:
        out2 = pl.pallas_call(
            _add_kernel,
            out_shape=jax.ShapeDtypeStruct((n_rows, w), dtype),
            grid_spec=pltpu.PrefetchScalarGridSpec(
                num_scalar_prefetch=0,
                grid=grid,
                in_specs=[tile_spec, tile_spec],
                out_specs=tile_spec,
            ),
            compiler_params=pltpu.CompilerParams(
                dimension_semantics=("parallel",)),
        )(x2, r2)
    else:
        alpha11 = jnp.asarray(alpha_scalar, dtype=jnp.float32).reshape(1, 1)
        out2 = pl.pallas_call(
            _scalar_scale_add_kernel,
            out_shape=jax.ShapeDtypeStruct((n_rows, w), dtype),
            grid_spec=pltpu.PrefetchScalarGridSpec(
                num_scalar_prefetch=0,
                grid=grid,
                in_specs=[
                    pl.BlockSpec(memory_space=pltpu.MemorySpace.SMEM),  # alpha (1,1)
                    tile_spec,
                    tile_spec,
                ],
                out_specs=tile_spec,
            ),
            compiler_params=pltpu.CompilerParams(
                dimension_semantics=("parallel",)),
        )(alpha11, x2, r2)

    return out2.reshape(shape)


def _residual_layerscale(x, x_res, alpha_row):
    """Layerscale path: alpha is (1, D), broadcast over the last (feature) dim."""
    shape = x.shape
    dtype = x.dtype
    d = shape[-1]
    n_tok = math.prod(shape) // d

    # Lane densification: pack `rep` consecutive tokens per row so the row width
    # is a multiple of 128 (unmasked full-lane stores); only when the token count
    # allows a *free* reshape — otherwise keep the natural (n_tok, d) view.
    rep = math.lcm(d, 128) // d
    if rep > 1 and n_tok % rep != 0:
        rep = 1

    w = d * rep
    n_rows = n_tok // rep
    x2 = x.reshape(n_rows, w)
    r2 = x_res.reshape(n_rows, w)
    alpha_wide = jnp.tile(alpha_row.reshape(1, d).astype(jnp.float32), (1, rep))

    tile_cols = _pick_tile_cols(w) if w % 128 == 0 else w
    tile_rows = _pick_tile_rows(n_rows, tile_cols, dtype)

    grid = (pl.cdiv(n_rows, tile_rows), w // tile_cols)   # ragged rows: no pad copy
    tile_spec = pl.BlockSpec((tile_rows, tile_cols), lambda i, j: (i, j))
    alpha_spec = pl.BlockSpec((1, tile_cols), lambda i, j: (0, j))

    out2 = pl.pallas_call(
        _layerscale_kernel,
        out_shape=jax.ShapeDtypeStruct((n_rows, w), dtype),
        grid_spec=pltpu.PrefetchScalarGridSpec(
            num_scalar_prefetch=0,
            grid=grid,
            in_specs=[tile_spec, tile_spec, alpha_spec],
            out_specs=tile_spec,
        ),
        compiler_params=pltpu.CompilerParams(
            dimension_semantics=("parallel", "parallel")),
    )(x2, r2, alpha_wide)

    return out2.reshape(shape)


# ----------------------------- module port -----------------------------------

class ResidualLayer:
    """JAX/Pallas port of the PyTorch ResidualLayer (rezero / layerscale / plain)."""

    def __init__(self, rezero=False, layerscale=False, alpha=0.1, dim=1):
        self.rezero = rezero
        self.layerscale = layerscale
        self.layerscale_init = alpha
        if rezero:
            # nn.Parameter(torch.zeros(1))
            self.alpha = jnp.zeros((1,), dtype=jnp.float32)
        elif layerscale:
            # nn.Parameter(torch.ones(1, dim) * alpha)
            self.alpha = jnp.ones((1, dim), dtype=jnp.float32) * alpha
        else:
            # nn.Parameter(torch.ones(1), requires_grad=False)
            self.alpha = jnp.ones((1,), dtype=jnp.float32)
        self.dim = self.alpha.shape[-1]

    def __call__(self, x, x_res):
        if not self.rezero and not self.layerscale:
            # plain residual: out = x + x_res (skip the multiply entirely)
            return _residual_flat(x, x_res, None)
        if self.rezero or self.alpha.shape[-1] == 1:
            # scalar alpha (rezero, or layerscale with dim=1): out = x * a + x_res
            return _residual_flat(x, x_res, self.alpha.reshape(-1)[0])
        # layerscale: alpha is (1, dim), broadcast over the last (feature) dim
        assert self.alpha.shape[-1] == x.shape[-1], \
            "layerscale dim must match the feature (last) dim"
        return _residual_layerscale(x, x_res, self.alpha)


# ----------------------------- demo / check ----------------------------------

if __name__ == "__main__":
    key = jax.random.PRNGKey(0)
    k1, k2, k3, k4 = jax.random.split(key, 4)

    B, S, D = 2, 8, 32  # batch=2, seq=8, hidden=32
    x = jax.random.normal(k1, (B, S, D), dtype=jnp.float32)
    x_res = jax.random.normal(k2, (B, S, D), dtype=jnp.float32)

    # 1) plain residual: out = x + x_res
    layer_plain = ResidualLayer()
    out_plain = jax.block_until_ready(layer_plain(x, x_res))
    assert jnp.allclose(out_plain, x + x_res, atol=1e-6)

    # 2) rezero: alpha = 0 -> out = x_res
    layer_rz = ResidualLayer(rezero=True)
    out_rz = jax.block_until_ready(layer_rz(x, x_res))
    assert jnp.allclose(out_rz, x * 0.0 + x_res, atol=1e-6)

    # 3) layerscale: alpha = ones(1, D) * 0.1 -> out = 0.1 * x + x_res
    layer_ls = ResidualLayer(layerscale=True, alpha=0.1, dim=D)
    out_ls = jax.block_until_ready(layer_ls(x, x_res))
    assert jnp.allclose(out_ls, x * layer_ls.alpha + x_res, atol=1e-6)

    # 4) odd shapes (exercise ragged / full-dim block fallbacks, no padding glue)
    xa = jax.random.normal(k3, (5, 37), dtype=jnp.float32)
    ra = jax.random.normal(k4, (5, 37), dtype=jnp.float32)
    out_odd = jax.block_until_ready(layer_plain(xa, ra))
    assert jnp.allclose(out_odd, xa + ra, atol=1e-6)

    xb = jax.random.normal(k3, (3, 7, 20), dtype=jnp.float32)
    rb = jax.random.normal(k4, (3, 7, 20), dtype=jnp.float32)
    layer_ls20 = ResidualLayer(layerscale=True, alpha=0.1, dim=20)
    out_ls20 = jax.block_until_ready(layer_ls20(xb, rb))
    assert jnp.allclose(out_ls20, xb * layer_ls20.alpha + rb, atol=1e-6)

    print("KERNEL_OK")
</pallas_src>

<mosaic_0001>
module attributes {stable_mosaic.version = 11 : i64} {
  func.func @_add_kernel(%arg0: i32, %arg1: memref<1x512xf32, #tpu.memory_space<vmem>>, %arg2: memref<1x512xf32, #tpu.memory_space<vmem>>, %arg3: memref<1x512xf32, #tpu.memory_space<vmem>>) attributes {dimension_semantics = [#tpu.dimension_semantics<parallel>], iteration_bounds = array<i64: 1>, scalar_prefetch = 0 : i64, scratch_operands = 0 : i64, tpu.core_type = #tpu.core_type<tc>, window_params = [{transform_indices = @transform_0, window_bounds = array<i64: 1, 512>}, {transform_indices = @transform_1, window_bounds = array<i64: 1, 512>}, {transform_indices = @transform_2, window_bounds = array<i64: 1, 512>}]} {
    %c0 = arith.constant 0 : index
    %c0_0 = arith.constant 0 : index
    %0 = vector.load %arg1[%c0, %c0_0] : memref<1x512xf32, #tpu.memory_space<vmem>>, vector<1x512xf32>
    %c0_1 = arith.constant 0 : index
    %c0_2 = arith.constant 0 : index
    %1 = vector.load %arg2[%c0_1, %c0_2] : memref<1x512xf32, #tpu.memory_space<vmem>>, vector<1x512xf32>
    %2 = arith.addf %0, %1 : vector<1x512xf32>
    %c0_3 = arith.constant 0 : index
    %c0_4 = arith.constant 0 : index
    %3 = vector.load %arg3[%c0_3, %c0_4] : memref<1x512xf32, #tpu.memory_space<vmem>>, vector<1x512xf32>
    tpu.vector_store %arg3[%c0_3, %c0_4], %2 {strides = array<i32>} : memref<1x512xf32, #tpu.memory_space<vmem>>, vector<1x512xf32>,
    return
  }
  func.func @transform_0(%arg0: i32) -> (i32, i32) {
    %c0_i32 = arith.constant 0 : i32
    %c0_i32_0 = arith.constant 0 : i32
    return %arg0, %c0_i32 : i32, i32
  }
  func.func @transform_1(%arg0: i32) -> (i32, i32) {
    %c0_i32 = arith.constant 0 : i32
    %c0_i32_0 = arith.constant 0 : i32
    return %arg0, %c0_i32 : i32, i32
  }
  func.func @transform_2(%arg0: i32) -> (i32, i32) {
    %c0_i32 = arith.constant 0 : i32
    %c0_i32_0 = arith.constant 0 : i32
    return %arg0, %c0_i32 : i32, i32
  }
}

</mosaic_0001>

<bundles_post_ra>
// kernel: tpu_custom_call.1
= control target key start
LH: loop header
LB: loop body
LE: loop exit
PB: predicated region body
PF: predicated region fallthrough
CT: control target
= control target key end

     0   :  { %7 = vsyncpa [#allocation3], 0  ;;  %s189_s0 = inlined_call_operand.hbm [shape: f32[1,512], index: 0, kind: input, shape index: {}]   ;;  %s190_s1 = inlined_call_operand.hbm [shape: f32[1,512], index: 1, kind: input, shape index: {}]   ;;  %s191_s2 = inlined_call_operand.hbm [shape: f32[1,512], index: 2, kind: output, shape index: {}]  }
   0x1   :  { %8 = vsyncpa [#allocation6], 0 }
   0x2   :  { %9 = vsyncpa [#allocation4], 0  ;;  %s135_s9 = smov [#allocation2]   ;;  %s136_s11 = smov [#allocation5]  }
   0x3   :  { %s16_s10 = sshll.u32 %s135_s9, 4  ;;  %s26_s12 = sshll.u32 %s136_s11, 4  ;;  %s17_s10 = int_to_ptr.vmem [resolvable:$true] %s16_s10  ;;  %s27_s12 = int_to_ptr.vmem [resolvable:$true] %s26_s12 }
   0x4   :  { %s63_s15 = scalar_lea.hbm %s189_s0, 64 }
   0x5   :  { %p64_p0 = scmp.ne.s32.totalorder %s189_s0, %s63_s15  ;;  %p67_p1 = scmp.lt.u32.totalorder %s63_s15, %s189_s0 }
   0x7   :  { %p69_p2 = pnand %p67_p1, %p64_p0 }
   0x9   :  { %72 = shalt.err (!%p69_p2)
}
   0xa   :  { %s73_s20 = scalar_lea.vmem %s17_s10, 64  ;;  %p78_p4 = scmp.lt.s32.totalorder %s17_s10, %s17_s10 }
   0xb   :  { %p74_p3 = scmp.ne.s32.totalorder %s17_s10, %s73_s20  ;;  %p79_p5 = scmp.lt.s32.totalorder %s73_s20, %s73_s20 }
   0xd   :  { %p80_p6 = por %p79_p5, %p78_p4 }
   0xf   :  { %p81_p7 = pnand %p80_p6, %p74_p3 }
  0x11   :  { %84 = shalt.err (!%p81_p7)
}
  0x12   :  { %19 = dma.hbm_to_vmem [thread:$0]  %s189_s0, 64, %s17_s10, [#allocation3]  }
  0x13   :  { %s85_s25 = scalar_lea.hbm %s190_s1, 64 }
  0x14   :  { %p86_p8 = scmp.ne.s32.totalorder %s190_s1, %s85_s25  ;;  %p89_p9 = scmp.lt.u32.totalorder %s85_s25, %s190_s1 }
  0x16   :  { %p91_p10 = pnand %p89_p9, %p86_p8 }
  0x18   :  { %94 = shalt.err (!%p91_p10)
}
  0x19   :  { %s95_s30 = scalar_lea.vmem %s27_s12, 64  ;;  %p100_p12 = scmp.lt.s32.totalorder %s27_s12, %s27_s12 }
  0x1a   :  { %p96_p11 = scmp.ne.s32.totalorder %s27_s12, %s95_s30  ;;  %p101_p13 = scmp.lt.s32.totalorder %s95_s30, %s95_s30 }
  0x1c   :  { %p102_p0 = por %p101_p13, %p100_p12 }
  0x1e   :  { %p103_p1 = pnand %p102_p0, %p96_p11 }
  0x20   :  { %106 = shalt.err (!%p103_p1)
}
  0x21   :  { %29 = dma.hbm_to_vmem [thread:$0]  %s190_s1, 64, %s27_s12, [#allocation6]  }
  0x22   :  { %129 = dma.done.wait [#allocation3], 64  }
  0x23   :  { %130 = vsyncadd [#allocation3], 4294967232 }
  0x24   :  { %131 = dma.done.wait [#allocation6], 64  }
  0x25   :  { %132 = vsyncadd [#allocation6], 4294967232  ;;  %v39_v0 = vlaneseq  ;;  %s137_s4 = smov [#allocation7]   ;;  %v36_v1 = vld [vmem:[#allocation2] sm:$0xf] }
  0x26   :  { %s50_s5 = sshll.u32 %s137_s4, 4  ;;  %v37_v2 = vld [vmem:[#allocation5] sm:$0xf]  ;;  %s51_s5 = int_to_ptr.vmem [resolvable:$true] %s50_s5 }
  0x27   :  { %vm41_vm0 = vcmp.lt.s32.totalorder %v39_v0, 512  ;;  %v38_v3 = vadd.f32 %v37_v2, %v36_v1  ;;  %s107_s6 = scalar_lea.vmem %s51_s5, 64  ;;  %p112_p3 = scmp.lt.s32.totalorder %s51_s5, %s51_s5 }
  0x28   :  { %p108_p2 = scmp.ne.s32.totalorder %s51_s5, %s107_s6  ;;  %p113_p4 = scmp.lt.s32.totalorder %s107_s6, %s107_s6 }
  0x29   :  { %43 = vst.msk [vmem:[#allocation7] sm:$0xf] %vm41_vm0, %v38_v3 }
  0x2a   :  { %p114_p5 = por %p113_p4, %p112_p3 }
  0x2c   :  { %p115_p6 = pnand %p114_p5, %p108_p2 }
  0x2e   :  { %118 = shalt.err (!%p115_p6)
}
  0x2f   :  { %s119_s8 = scalar_lea.hbm %s191_s2, 64 }
  0x30   :  { %p120_p7 = scmp.ne.s32.totalorder %s191_s2, %s119_s8  ;;  %p123_p8 = scmp.lt.u32.totalorder %s119_s8, %s191_s2 }
  0x32   :  { %p125_p9 = pnand %p123_p8, %p120_p7 }
  0x34   :  { %128 = shalt.err (!%p125_p9)
}
  0x35   :  { %53 = dma.vmem_to_hbm [thread:$0]  %s51_s5, 64, %s191_s2, [#allocation4]  }
  0x36   :  { %133 = dma.done.wait [#allocation4], 64  }
  0x37   :  { %134 = vsyncadd [#allocation4], 4294967232 }
  0x38   :  { %57 = vsyncpa [#allocation3], 1 }
  0x39   :  { %58 = vsyncpa [#allocation6], 1 }
  0x3a   :  { %59 = vsyncpa [#allocation4], 1 }

</bundles_post_ra>
